<compile_context>
chip_gen: v5e
topology: v5e:2x2
jax: 0.10.0
libtpu: 0.0.40
codegen_flags: <defaults>
</compile_context>

<pallas_src>
import jax
import jax.numpy as jnp
from jax.experimental import pallas as pl
from jax.experimental.pallas import tpu as pltpu


_K1 = 75            # 3 * 5 * 5 (conv1 reduction, kept UNPADDED in HBM)
_C1 = 64            # conv1 out channels
_C2 = 64            # conv2 out channels
_C3 = 16            # conv3 out channels
_C3_PAD = 64        # conv3 lanes inside the merged output slab
_OUT_LANES = _C2 + _C3_PAD   # 128-lane merged x2|x3 output slab
_TAPS = 9           # 3 * 3 conv2 taps per 15x15 super-patch
_TM_CAP = 1024      # M-tile cap (mem-bound sweet spot per measured tiling data)


def _round_up(x, m):
    return (x + m - 1) // m * m


# ----------------------------- Pallas kernel --------------------------------

def _fused_kernel(cols_ref, w1_ref, w2_ref, w3_ref, x1_ref, out_ref, x2_acc):
    """One M-tile of the fused conv1 -> conv2 -> conv3 chain.

    cols_ref: (9, tm, 75)   im2col'd 5x5x3 patches, tap-major (unpadded K)
    w1_ref:   (75, 64)      conv1 weight  [K1, Cout1]
    w2_ref:   (9, 64, 64)   conv2 weight  per-tap [Cin, Cout2]
    w3_ref:   (64, 64)      conv3 weight  [Cin, Cout3 padded 16 -> 64 lanes]
    x1_ref:   (9, tm, 64)   conv1 output (returned), tap-major
    out_ref:  (tm, 128)     merged slab: x2 in lanes 0:64, x3 in lanes 64:80
    x2_acc:   (tm, 64)      VMEM scratch accumulator for conv2
    """
    taps, tm, _ = cols_ref.shape

    # conv1: one fused MXU GEMM across all 9 taps (leading-dim merge reshape;
    # tm is a multiple of 8 so this is layout-free).
    cols = cols_ref[...].reshape(taps * tm, _K1)
    x1_all = jnp.dot(cols, w1_ref[...], preferred_element_type=jnp.float32)
    x1_taps = x1_all.reshape(taps, tm, _C1)
    x1_ref[...] = x1_taps

    # conv2: 9 per-tap [tm,64]@[64,64] accumulations into a VMEM scratch ref
    # (no in-kernel relayout; bounds vreg pressure at large tm).
    x2_acc[...] = jnp.dot(x1_taps[0], w2_ref[0],
                          preferred_element_type=jnp.float32)
    for p in range(1, _TAPS):   # static unroll
        x2_acc[...] += jnp.dot(x1_taps[p], w2_ref[p],
                               preferred_element_type=jnp.float32)
    x2 = x2_acc[...]

    # conv3 (weight padded to 64 lanes) merged with x2 into one lane-dense
    # 128-wide store.
    x3p = jnp.dot(x2, w3_ref[...], preferred_element_type=jnp.float32)
    out_ref[...] = jnp.concatenate([x2, x3p], axis=-1)


# ------------------------------- glue (JAX) ----------------------------------

def _prepare_weights(params):
    """Hoisted once per trace: OIHW conv weights -> kernel-ready GEMM matrices."""
    w1, w2, w3 = params
    w1_mat = w1.reshape(_C1, _K1).T                               # (75, 64)
    w2_taps = w2.transpose(2, 3, 1, 0).reshape(_TAPS, _C1, _C2)   # (9, 64, 64)
    w3_mat = w3.reshape(_C3, _C2).T                               # (64, 16)
    w3_mat = jnp.pad(w3_mat, ((0, 0), (0, _C3_PAD - _C3)))        # (64, 64)
    return w1_mat, w2_taps, w3_mat


def net_forward(x, params):
    """Forward pass of Net. x: NCHW f32. Returns (x1, x2, x3) in NCHW."""
    N, C, H, W = x.shape
    assert C == 3
    assert H % 15 == 0 and W % 15 == 0, "fused path needs H, W multiples of 15"
    H2, W2 = H // 15, W // 15
    H1, W1 = H // 5, W // 5
    M2 = N * H2 * W2

    # M tile: multiple of 8 (sublane), capped at 1024; pad M so the grid divides.
    tm = min(_TM_CAP, _round_up(M2, 8))
    M2p = _round_up(M2, tm)
    grid = (M2p // tm,)

    # im2col for conv1, tap-major: (dy, dx, n, h2, w2, c, ky, kx) -> (9, M2p, 75)
    p = x.reshape(N, 3, H2, 3, 5, W2, 3, 5)
    p = p.transpose(3, 6, 0, 2, 5, 1, 4, 7)
    cols = p.reshape(_TAPS, M2, _K1)
    if M2p != M2:
        cols = jnp.pad(cols, ((0, 0), (0, M2p - M2), (0, 0)))

    w1_mat, w2_taps, w3_mat = _prepare_weights(params)

    flops = 2 * M2p * (_TAPS * _K1 * _C1 + _TAPS * _C1 * _C2 + _C2 * _C3_PAD)
    bytes_accessed = 4 * (cols.size + w1_mat.size + w2_taps.size + w3_mat.size
                          + _TAPS * M2p * _C1 + M2p * _OUT_LANES)

    x1_t, out23 = pl.pallas_call(
        _fused_kernel,
        grid=grid,
        in_specs=[
            # cols: last block dim = full extent 75 (no K pad in the HBM stream)
            pl.BlockSpec((_TAPS, tm, _K1), lambda i: (0, i, 0)),
            pl.BlockSpec((_K1, _C1), lambda i: (0, 0)),            # resident
            pl.BlockSpec((_TAPS, _C1, _C2), lambda i: (0, 0, 0)),  # resident
            pl.BlockSpec((_C2, _C3_PAD), lambda i: (0, 0)),        # resident
        ],
        out_specs=[
            pl.BlockSpec((_TAPS, tm, _C1), lambda i: (0, i, 0)),
            pl.BlockSpec((tm, _OUT_LANES), lambda i: (i, 0)),
        ],
        out_shape=(
            jax.ShapeDtypeStruct((_TAPS, M2p, _C1), jnp.float32),
            jax.ShapeDtypeStruct((M2p, _OUT_LANES), jnp.float32),
        ),
        scratch_shapes=[pltpu.VMEM((tm, _C2), jnp.float32)],
        compiler_params=pltpu.CompilerParams(
            # TODO(synk): on v7x verify this axis shards across both TensorCores;
            # if xprof shows one TC idle, switch to pltpu.CORE_PARALLEL.
            dimension_semantics=("parallel",),
            vmem_limit_bytes=48 * 1024 * 1024,
        ),
        cost_estimate=pl.CostEstimate(
            flops=flops, transcendentals=0, bytes_accessed=bytes_accessed),
    )(cols, w1_mat, w2_taps, w3_mat)

    # Unpack kernel outputs back to NCHW (single layout conversion per output).
    x1 = x1_t[:, :M2, :].reshape(3, 3, N, H2, W2, _C1)
    x1 = x1.transpose(2, 5, 3, 0, 4, 1).reshape(N, _C1, H1, W1)
    x2 = out23[:M2, :_C2].reshape(N, H2, W2, _C2).transpose(0, 3, 1, 2)
    x3 = out23[:M2, _C2:_C2 + _C3].reshape(N, H2, W2, _C3).transpose(0, 3, 1, 2)
    return x1, x2, x3


def init_params(key):
    """Deterministic weight init (shapes match the PyTorch module)."""
    k1, k2, k3 = jax.random.split(key, 3)

    def kaiming(k, shape):
        fan_in = shape[1] * shape[2] * shape[3]
        return jax.random.normal(k, shape, jnp.float32) * (1.0 / jnp.sqrt(fan_in))

    w1 = kaiming(k1, (64, 3, 5, 5))
    w2 = kaiming(k2, (64, 64, 3, 3))
    w3 = kaiming(k3, (16, 64, 1, 1))
    return w1, w2, w3


def _conv_ref(x, w, stride):
    return jax.lax.conv_general_dilated(
        x, w, window_strides=(stride, stride), padding="VALID",
        dimension_numbers=("NCHW", "OIHW", "NCHW"))


if __name__ == "__main__":
    key = jax.random.PRNGKey(0)
    kx, kp = jax.random.split(key)

    # Small input consistent with the module: H, W divisible by 15 (= 5 * 3).
    x = jax.random.normal(kx, (2, 3, 30, 30), jnp.float32)
    params = init_params(kp)

    fwd = jax.jit(net_forward)
    x1, x2, x3 = jax.block_until_ready(fwd(x, params))

    # Cross-check against XLA conv reference.
    r1 = _conv_ref(x, params[0], 5)
    r2 = _conv_ref(r1, params[1], 3)
    r3 = _conv_ref(r2, params[2], 1)
    assert x1.shape == (2, 64, 6, 6)
    assert x2.shape == (2, 64, 2, 2)
    assert x3.shape == (2, 16, 2, 2)
    assert jnp.allclose(x1, r1, atol=1e-4, rtol=1e-4)
    assert jnp.allclose(x2, r2, atol=1e-4, rtol=1e-4)
    assert jnp.allclose(x3, r3, atol=1e-4, rtol=1e-4)

    print("KERNEL_OK")
</pallas_src>

<mosaic_0001>
module attributes {stable_mosaic.version = 11 : i64} {
  func.func @_fused_kernel(%arg0: i32, %arg1: memref<9x8x75xf32, #tpu.memory_space<vmem>>, %arg2: memref<75x64xf32, #tpu.memory_space<vmem>>, %arg3: memref<9x64x64xf32, #tpu.memory_space<vmem>>, %arg4: memref<64x64xf32, #tpu.memory_space<vmem>>, %arg5: memref<9x8x64xf32, #tpu.memory_space<vmem>>, %arg6: memref<8x128xf32, #tpu.memory_space<vmem>>, %arg7: memref<8x64xf32, #tpu.memory_space<vmem>>) attributes {dimension_semantics = [#tpu.dimension_semantics<parallel>], iteration_bounds = array<i64: 1>, scalar_prefetch = 0 : i64, scratch_operands = 1 : i64, tpu.core_type = #tpu.core_type<tc>, window_params = [{transform_indices = @transform_0, window_bounds = array<i64: 9, 8, 75>}, {pipeline_mode = #tpu.pipeline_mode<synchronous>, transform_indices = @transform_1, window_bounds = array<i64: 75, 64>}, {pipeline_mode = #tpu.pipeline_mode<synchronous>, transform_indices = @transform_2, window_bounds = array<i64: 9, 64, 64>}, {pipeline_mode = #tpu.pipeline_mode<synchronous>, transform_indices = @transform_3, window_bounds = array<i64: 64, 64>}, {transform_indices = @transform_4, window_bounds = array<i64: 9, 8, 64>}, {transform_indices = @transform_5, window_bounds = array<i64: 8, 128>}]} {
    %c0 = arith.constant 0 : index
    %c0_0 = arith.constant 0 : index
    %c0_1 = arith.constant 0 : index
    %0 = vector.load %arg1[%c0, %c0_0, %c0_1] : memref<9x8x75xf32, #tpu.memory_space<vmem>>, vector<9x8x75xf32>
    %1 = vector.shape_cast %0 : vector<9x8x75xf32> to vector<72x75xf32>
    %c0_2 = arith.constant 0 : index
    %c0_3 = arith.constant 0 : index
    %2 = vector.load %arg2[%c0_2, %c0_3] : memref<75x64xf32, #tpu.memory_space<vmem>>, vector<75x64xf32>
    %cst = arith.constant dense<0.000000e+00> : vector<72x64xf32>
    %3 = tpu.matmul %1, %2, %cst {dimension_numbers = #tpu.dot_dimension_numbers<[1], [0], [0], [1], [0, 0, 1, 1], [], []>} : vector<72x75xf32>, vector<75x64xf32>, vector<72x64xf32> -> vector<72x64xf32>
    %4 = vector.shape_cast %3 : vector<72x64xf32> to vector<9x8x64xf32>
    %c0_4 = arith.constant 0 : index
    %c0_5 = arith.constant 0 : index
    %c0_6 = arith.constant 0 : index
    %5 = vector.load %arg5[%c0_4, %c0_5, %c0_6] : memref<9x8x64xf32, #tpu.memory_space<vmem>>, vector<9x8x64xf32>
    tpu.vector_store %arg5[%c0_4, %c0_5, %c0_6], %4 {strides = array<i32>} : memref<9x8x64xf32, #tpu.memory_space<vmem>>, vector<9x8x64xf32>,
    %6 = vector.extract_strided_slice %4 {offsets = [0, 0, 0], sizes = [1, 8, 64], strides = [1, 1, 1]} : vector<9x8x64xf32> to vector<1x8x64xf32>
    %7 = vector.shape_cast %6 : vector<1x8x64xf32> to vector<8x64xf32>
    %c0_7 = arith.constant 0 : index
    %c0_8 = arith.constant 0 : index
    %c0_9 = arith.constant 0 : index
    %8 = vector.load %arg3[%c0_7, %c0_8, %c0_9] : memref<9x64x64xf32, #tpu.memory_space<vmem>>, vector<1x64x64xf32>
    %9 = vector.shape_cast %8 : vector<1x64x64xf32> to vector<64x64xf32>
    %cst_10 = arith.constant dense<0.000000e+00> : vector<8x64xf32>
    %10 = tpu.matmul %7, %9, %cst_10 {dimension_numbers = #tpu.dot_dimension_numbers<[1], [0], [0], [1], [0, 0, 1, 1], [], []>} : vector<8x64xf32>, vector<64x64xf32>, vector<8x64xf32> -> vector<8x64xf32>
    %c0_11 = arith.constant 0 : index
    %c0_12 = arith.constant 0 : index
    %11 = vector.load %arg7[%c0_11, %c0_12] : memref<8x64xf32, #tpu.memory_space<vmem>>, vector<8x64xf32>
    tpu.vector_store %arg7[%c0_11, %c0_12], %10 {strides = array<i32>} : memref<8x64xf32, #tpu.memory_space<vmem>>, vector<8x64xf32>,
    %c0_13 = arith.constant 0 : index
    %c0_14 = arith.constant 0 : index
    %12 = vector.load %arg7[%c0_13, %c0_14] : memref<8x64xf32, #tpu.memory_space<vmem>>, vector<8x64xf32>
    %13 = vector.extract_strided_slice %4 {offsets = [1, 0, 0], sizes = [1, 8, 64], strides = [1, 1, 1]} : vector<9x8x64xf32> to vector<1x8x64xf32>
    %14 = vector.shape_cast %13 : vector<1x8x64xf32> to vector<8x64xf32>
    %c1 = arith.constant 1 : index
    %c0_15 = arith.constant 0 : index
    %c0_16 = arith.constant 0 : index
    %15 = vector.load %arg3[%c1, %c0_15, %c0_16] : memref<9x64x64xf32, #tpu.memory_space<vmem>>, vector<1x64x64xf32>
    %16 = vector.shape_cast %15 : vector<1x64x64xf32> to vector<64x64xf32>
    %cst_17 = arith.constant dense<0.000000e+00> : vector<8x64xf32>
    %17 = tpu.matmul %14, %16, %cst_17 {dimension_numbers = #tpu.dot_dimension_numbers<[1], [0], [0], [1], [0, 0, 1, 1], [], []>} : vector<8x64xf32>, vector<64x64xf32>, vector<8x64xf32> -> vector<8x64xf32>
    %18 = arith.addf %12, %17 : vector<8x64xf32>
    %c0_18 = arith.constant 0 : index
    %c0_19 = arith.constant 0 : index
    %19 = vector.load %arg7[%c0_18, %c0_19] : memref<8x64xf32, #tpu.memory_space<vmem>>, vector<8x64xf32>
    tpu.vector_store %arg7[%c0_18, %c0_19], %18 {strides = array<i32>} : memref<8x64xf32, #tpu.memory_space<vmem>>, vector<8x64xf32>,
    %c0_20 = arith.constant 0 : index
    %c0_21 = arith.constant 0 : index
    %20 = vector.load %arg7[%c0_20, %c0_21] : memref<8x64xf32, #tpu.memory_space<vmem>>, vector<8x64xf32>
    %21 = vector.extract_strided_slice %4 {offsets = [2, 0, 0], sizes = [1, 8, 64], strides = [1, 1, 1]} : vector<9x8x64xf32> to vector<1x8x64xf32>
    %22 = vector.shape_cast %21 : vector<1x8x64xf32> to vector<8x64xf32>
    %c2 = arith.constant 2 : index
    %c0_22 = arith.constant 0 : index
    %c0_23 = arith.constant 0 : index
    %23 = vector.load %arg3[%c2, %c0_22, %c0_23] : memref<9x64x64xf32, #tpu.memory_space<vmem>>, vector<1x64x64xf32>
    %24 = vector.shape_cast %23 : vector<1x64x64xf32> to vector<64x64xf32>
    %cst_24 = arith.constant dense<0.000000e+00> : vector<8x64xf32>
    %25 = tpu.matmul %22, %24, %cst_24 {dimension_numbers = #tpu.dot_dimension_numbers<[1], [0], [0], [1], [0, 0, 1, 1], [], []>} : vector<8x64xf32>, vector<64x64xf32>, vector<8x64xf32> -> vector<8x64xf32>
    %26 = arith.addf %20, %25 : vector<8x64xf32>
    %c0_25 = arith.constant 0 : index
    %c0_26 = arith.constant 0 : index
    %27 = vector.load %arg7[%c0_25, %c0_26] : memref<8x64xf32, #tpu.memory_space<vmem>>, vector<8x64xf32>
    tpu.vector_store %arg7[%c0_25, %c0_26], %26 {strides = array<i32>} : memref<8x64xf32, #tpu.memory_space<vmem>>, vector<8x64xf32>,
    %c0_27 = arith.constant 0 : index
    %c0_28 = arith.constant 0 : index
    %28 = vector.load %arg7[%c0_27, %c0_28] : memref<8x64xf32, #tpu.memory_space<vmem>>, vector<8x64xf32>
    %29 = vector.extract_strided_slice %4 {offsets = [3, 0, 0], sizes = [1, 8, 64], strides = [1, 1, 1]} : vector<9x8x64xf32> to vector<1x8x64xf32>
    %30 = vector.shape_cast %29 : vector<1x8x64xf32> to vector<8x64xf32>
    %c3 = arith.constant 3 : index
    %c0_29 = arith.constant 0 : index
    %c0_30 = arith.constant 0 : index
    %31 = vector.load %arg3[%c3, %c0_29, %c0_30] : memref<9x64x64xf32, #tpu.memory_space<vmem>>, vector<1x64x64xf32>
    %32 = vector.shape_cast %31 : vector<1x64x64xf32> to vector<64x64xf32>
    %cst_31 = arith.constant dense<0.000000e+00> : vector<8x64xf32>
    %33 = tpu.matmul %30, %32, %cst_31 {dimension_numbers = #tpu.dot_dimension_numbers<[1], [0], [0], [1], [0, 0, 1, 1], [], []>} : vector<8x64xf32>, vector<64x64xf32>, vector<8x64xf32> -> vector<8x64xf32>
    %34 = arith.addf %28, %33 : vector<8x64xf32>
    %c0_32 = arith.constant 0 : index
    %c0_33 = arith.constant 0 : index
    %35 = vector.load %arg7[%c0_32, %c0_33] : memref<8x64xf32, #tpu.memory_space<vmem>>, vector<8x64xf32>
    tpu.vector_store %arg7[%c0_32, %c0_33], %34 {strides = array<i32>} : memref<8x64xf32, #tpu.memory_space<vmem>>, vector<8x64xf32>,
    %c0_34 = arith.constant 0 : index
    %c0_35 = arith.constant 0 : index
    %36 = vector.load %arg7[%c0_34, %c0_35] : memref<8x64xf32, #tpu.memory_space<vmem>>, vector<8x64xf32>
    %37 = vector.extract_strided_slice %4 {offsets = [4, 0, 0], sizes = [1, 8, 64], strides = [1, 1, 1]} : vector<9x8x64xf32> to vector<1x8x64xf32>
    %38 = vector.shape_cast %37 : vector<1x8x64xf32> to vector<8x64xf32>
    %c4 = arith.constant 4 : index
    %c0_36 = arith.constant 0 : index
    %c0_37 = arith.constant 0 : index
    %39 = vector.load %arg3[%c4, %c0_36, %c0_37] : memref<9x64x64xf32, #tpu.memory_space<vmem>>, vector<1x64x64xf32>
    %40 = vector.shape_cast %39 : vector<1x64x64xf32> to vector<64x64xf32>
    %cst_38 = arith.constant dense<0.000000e+00> : vector<8x64xf32>
    %41 = tpu.matmul %38, %40, %cst_38 {dimension_numbers = #tpu.dot_dimension_numbers<[1], [0], [0], [1], [0, 0, 1, 1], [], []>} : vector<8x64xf32>, vector<64x64xf32>, vector<8x64xf32> -> vector<8x64xf32>
    %42 = arith.addf %36, %41 : vector<8x64xf32>
    %c0_39 = arith.constant 0 : index
    %c0_40 = arith.constant 0 : index
    %43 = vector.load %arg7[%c0_39, %c0_40] : memref<8x64xf32, #tpu.memory_space<vmem>>, vector<8x64xf32>
    tpu.vector_store %arg7[%c0_39, %c0_40], %42 {strides = array<i32>} : memref<8x64xf32, #tpu.memory_space<vmem>>, vector<8x64xf32>,
    %c0_41 = arith.constant 0 : index
    %c0_42 = arith.constant 0 : index
    %44 = vector.load %arg7[%c0_41, %c0_42] : memref<8x64xf32, #tpu.memory_space<vmem>>, vector<8x64xf32>
    %45 = vector.extract_strided_slice %4 {offsets = [5, 0, 0], sizes = [1, 8, 64], strides = [1, 1, 1]} : vector<9x8x64xf32> to vector<1x8x64xf32>
    %46 = vector.shape_cast %45 : vector<1x8x64xf32> to vector<8x64xf32>
    %c5 = arith.constant 5 : index
    %c0_43 = arith.constant 0 : index
    %c0_44 = arith.constant 0 : index
    %47 = vector.load %arg3[%c5, %c0_43, %c0_44] : memref<9x64x64xf32, #tpu.memory_space<vmem>>, vector<1x64x64xf32>
    %48 = vector.shape_cast %47 : vector<1x64x64xf32> to vector<64x64xf32>
    %cst_45 = arith.constant dense<0.000000e+00> : vector<8x64xf32>
    %49 = tpu.matmul %46, %48, %cst_45 {dimension_numbers = #tpu.dot_dimension_numbers<[1], [0], [0], [1], [0, 0, 1, 1], [], []>} : vector<8x64xf32>, vector<64x64xf32>, vector<8x64xf32> -> vector<8x64xf32>
    %50 = arith.addf %44, %49 : vector<8x64xf32>
    %c0_46 = arith.constant 0 : index
    %c0_47 = arith.constant 0 : index
    %51 = vector.load %arg7[%c0_46, %c0_47] : memref<8x64xf32, #tpu.memory_space<vmem>>, vector<8x64xf32>
    tpu.vector_store %arg7[%c0_46, %c0_47], %50 {strides = array<i32>} : memref<8x64xf32, #tpu.memory_space<vmem>>, vector<8x64xf32>,
    %c0_48 = arith.constant 0 : index
    %c0_49 = arith.constant 0 : index
    %52 = vector.load %arg7[%c0_48, %c0_49] : memref<8x64xf32, #tpu.memory_space<vmem>>, vector<8x64xf32>
    %53 = vector.extract_strided_slice %4 {offsets = [6, 0, 0], sizes = [1, 8, 64], strides = [1, 1, 1]} : vector<9x8x64xf32> to vector<1x8x64xf32>
    %54 = vector.shape_cast %53 : vector<1x8x64xf32> to vector<8x64xf32>
    %c6 = arith.constant 6 : index
    %c0_50 = arith.constant 0 : index
    %c0_51 = arith.constant 0 : index
    %55 = vector.load %arg3[%c6, %c0_50, %c0_51] : memref<9x64x64xf32, #tpu.memory_space<vmem>>, vector<1x64x64xf32>
    %56 = vector.shape_cast %55 : vector<1x64x64xf32> to vector<64x64xf32>
    %cst_52 = arith.constant dense<0.000000e+00> : vector<8x64xf32>
    %57 = tpu.matmul %54, %56, %cst_52 {dimension_numbers = #tpu.dot_dimension_numbers<[1], [0], [0], [1], [0, 0, 1, 1], [], []>} : vector<8x64xf32>, vector<64x64xf32>, vector<8x64xf32> -> vector<8x64xf32>
    %58 = arith.addf %52, %57 : vector<8x64xf32>
    %c0_53 = arith.constant 0 : index
    %c0_54 = arith.constant 0 : index
    %59 = vector.load %arg7[%c0_53, %c0_54] : memref<8x64xf32, #tpu.memory_space<vmem>>, vector<8x64xf32>
    tpu.vector_store %arg7[%c0_53, %c0_54], %58 {strides = array<i32>} : memref<8x64xf32, #tpu.memory_space<vmem>>, vector<8x64xf32>,
    %c0_55 = arith.constant 0 : index
    %c0_56 = arith.constant 0 : index
    %60 = vector.load %arg7[%c0_55, %c0_56] : memref<8x64xf32, #tpu.memory_space<vmem>>, vector<8x64xf32>
    %61 = vector.extract_strided_slice %4 {offsets = [7, 0, 0], sizes = [1, 8, 64], strides = [1, 1, 1]} : vector<9x8x64xf32> to vector<1x8x64xf32>
    %62 = vector.shape_cast %61 : vector<1x8x64xf32> to vector<8x64xf32>
    %c7 = arith.constant 7 : index
    %c0_57 = arith.constant 0 : index
    %c0_58 = arith.constant 0 : index
    %63 = vector.load %arg3[%c7, %c0_57, %c0_58] : memref<9x64x64xf32, #tpu.memory_space<vmem>>, vector<1x64x64xf32>
    %64 = vector.shape_cast %63 : vector<1x64x64xf32> to vector<64x64xf32>
    %cst_59 = arith.constant dense<0.000000e+00> : vector<8x64xf32>
    %65 = tpu.matmul %62, %64, %cst_59 {dimension_numbers = #tpu.dot_dimension_numbers<[1], [0], [0], [1], [0, 0, 1, 1], [], []>} : vector<8x64xf32>, vector<64x64xf32>, vector<8x64xf32> -> vector<8x64xf32>
    %66 = arith.addf %60, %65 : vector<8x64xf32>
    %c0_60 = arith.constant 0 : index
    %c0_61 = arith.constant 0 : index
    %67 = vector.load %arg7[%c0_60, %c0_61] : memref<8x64xf32, #tpu.memory_space<vmem>>, vector<8x64xf32>
    tpu.vector_store %arg7[%c0_60, %c0_61], %66 {strides = array<i32>} : memref<8x64xf32, #tpu.memory_space<vmem>>, vector<8x64xf32>,
    %c0_62 = arith.constant 0 : index
    %c0_63 = arith.constant 0 : index
    %68 = vector.load %arg7[%c0_62, %c0_63] : memref<8x64xf32, #tpu.memory_space<vmem>>, vector<8x64xf32>
    %69 = vector.extract_strided_slice %4 {offsets = [8, 0, 0], sizes = [1, 8, 64], strides = [1, 1, 1]} : vector<9x8x64xf32> to vector<1x8x64xf32>
    %70 = vector.shape_cast %69 : vector<1x8x64xf32> to vector<8x64xf32>
    %c8 = arith.constant 8 : index
    %c0_64 = arith.constant 0 : index
    %c0_65 = arith.constant 0 : index
    %71 = vector.load %arg3[%c8, %c0_64, %c0_65] : memref<9x64x64xf32, #tpu.memory_space<vmem>>, vector<1x64x64xf32>
    %72 = vector.shape_cast %71 : vector<1x64x64xf32> to vector<64x64xf32>
    %cst_66 = arith.constant dense<0.000000e+00> : vector<8x64xf32>
    %73 = tpu.matmul %70, %72, %cst_66 {dimension_numbers = #tpu.dot_dimension_numbers<[1], [0], [0], [1], [0, 0, 1, 1], [], []>} : vector<8x64xf32>, vector<64x64xf32>, vector<8x64xf32> -> vector<8x64xf32>
    %74 = arith.addf %68, %73 : vector<8x64xf32>
    %c0_67 = arith.constant 0 : index
    %c0_68 = arith.constant 0 : index
    %75 = vector.load %arg7[%c0_67, %c0_68] : memref<8x64xf32, #tpu.memory_space<vmem>>, vector<8x64xf32>
    tpu.vector_store %arg7[%c0_67, %c0_68], %74 {strides = array<i32>} : memref<8x64xf32, #tpu.memory_space<vmem>>, vector<8x64xf32>,
    %c0_69 = arith.constant 0 : index
    %c0_70 = arith.constant 0 : index
    %76 = vector.load %arg7[%c0_69, %c0_70] : memref<8x64xf32, #tpu.memory_space<vmem>>, vector<8x64xf32>
    %c0_71 = arith.constant 0 : index
    %c0_72 = arith.constant 0 : index
    %77 = vector.load %arg4[%c0_71, %c0_72] : memref<64x64xf32, #tpu.memory_space<vmem>>, vector<64x64xf32>
    %cst_73 = arith.constant dense<0.000000e+00> : vector<8x64xf32>
    %78 = tpu.matmul %76, %77, %cst_73 {dimension_numbers = #tpu.dot_dimension_numbers<[1], [0], [0], [1], [0, 0, 1, 1], [], []>} : vector<8x64xf32>, vector<64x64xf32>, vector<8x64xf32> -> vector<8x64xf32>
    %79 = tpu.concatenate %76, %78 in 1 : vector<8x64xf32>, vector<8x64xf32> -> vector<8x128xf32>
    %c0_74 = arith.constant 0 : index
    %c0_75 = arith.constant 0 : index
    %80 = vector.load %arg6[%c0_74, %c0_75] : memref<8x128xf32, #tpu.memory_space<vmem>>, vector<8x128xf32>
    tpu.vector_store %arg6[%c0_74, %c0_75], %79 {strides = array<i32>} : memref<8x128xf32, #tpu.memory_space<vmem>>, vector<8x128xf32>,
    return
  }
  func.func @transform_0(%arg0: i32) -> (i32, i32, i32) {
    %c0_i32 = arith.constant 0 : i32
    %c0_i32_0 = arith.constant 0 : i32
    %c0_i32_1 = arith.constant 0 : i32
    return %c0_i32, %arg0, %c0_i32_0 : i32, i32, i32
  }
  func.func @transform_1(%arg0: i32) -> (i32, i32) {
    %c0_i32 = arith.constant 0 : i32
    %c0_i32_0 = arith.constant 0 : i32
    %c0_i32_1 = arith.constant 0 : i32
    return %c0_i32, %c0_i32_0 : i32, i32
  }
  func.func @transform_2(%arg0: i32) -> (i32, i32, i32) {
    %c0_i32 = arith.constant 0 : i32
    %c0_i32_0 = arith.constant 0 : i32
    %c0_i32_1 = arith.constant 0 : i32
    %c0_i32_2 = arith.constant 0 : i32
    return %c0_i32, %c0_i32_0, %c0_i32_1 : i32, i32, i32
  }
  func.func @transform_3(%arg0: i32) -> (i32, i32) {
    %c0_i32 = arith.constant 0 : i32
    %c0_i32_0 = arith.constant 0 : i32
    %c0_i32_1 = arith.constant 0 : i32
    return %c0_i32, %c0_i32_0 : i32, i32
  }
  func.func @transform_4(%arg0: i32) -> (i32, i32, i32) {
    %c0_i32 = arith.constant 0 : i32
    %c0_i32_0 = arith.constant 0 : i32
    %c0_i32_1 = arith.constant 0 : i32
    return %c0_i32, %arg0, %c0_i32_0 : i32, i32, i32
  }
  func.func @transform_5(%arg0: i32) -> (i32, i32) {
    %c0_i32 = arith.constant 0 : i32
    %c0_i32_0 = arith.constant 0 : i32
    return %arg0, %c0_i32 : i32, i32
  }
}

</mosaic_0001>

<bundles_post_ra>
// kernel: net_forward.1
= control target key start
LH: loop header
LB: loop body
LE: loop exit
PB: predicated region body
PF: predicated region fallthrough
CT: control target
= control target key end

     0   :  { %vm66_vm0 = vcmask 1042432   ;;  %vm38_vm1 = vcmask 613376   ;;  %vm114_vm2 = vcmask 523264   ;;  %s973_s1 = inlined_call_operand.vmem [shape: f32[75,64], index: 1, kind: input, shape index: {}]   ;;  %s974_s0 = inlined_call_operand.vmem [shape: f32[9,8,75], index: 0, kind: input, shape index: {}]   ;;  %s975_s2 = inlined_call_operand.vmem [shape: f32[9,64,64], index: 2, kind: input, shape index: {}]   ;;  %s976_s4 = inlined_call_operand.vmem [shape: f32[9,8,64], index: 4, kind: output, shape index: {0}]   ;;  %s977_s3 = inlined_call_operand.vmem [shape: f32[64,64], index: 3, kind: input, shape index: {}]   ;;  %s978_s5 = inlined_call_operand.vmem [shape: f32[8,128], index: 5, kind: output, shape index: {1}]  }
   0x1   :  { %v37_v0 = vld [vmem:[%s973_s1 + $0x48] sm:$0x7]  ;;  %v36_v1 = vld [vmem:[%s973_s1 + $0x40] sm:$0xff]  ;;  %v35_v2 = vld [vmem:[%s973_s1 + $0x38] sm:$0xff] }
   0x2   :  { %482 = vmatpush.msk.msra.mxu0 %vm66_vm0, %v37_v0  ;;  %566 = vmatpush.msk.msra.mxu2 %vm66_vm0, %v37_v0  ;;  %v34_v3 = vld [vmem:[%s973_s1 + $0x30] sm:$0xff]  ;;  %v33_v4 = vld [vmem:[%s973_s1 + $0x28] sm:$0xff]  ;;  %v32_v5 = vld [vmem:[%s973_s1 + $0x20] sm:$0xff] }
   0x3   :  { %v31_v6 = vld [vmem:[%s973_s1 + $0x18] sm:$0xff]  ;;  %v30_v7 = vld [vmem:[%s973_s1 + $0x10] sm:$0xff]  ;;  %v29_v8 = vld [vmem:[%s973_s1 + $0x8] sm:$0xff] }
   0x4   :  { %77 = vmatpush.msra.mxu0 %v36_v1  ;;  %567 = vmatpush.msra.mxu2 %v36_v1  ;;  %v28_v9 = vld [vmem:[%s973_s1] sm:$0xff]  ;;  %v20_v11 = vld [vmem:[%s974_s0 + $0x8] sm:$0xff]  ;;  %v26_v12 = vld [vmem:[%s974_s0 + $0x38] sm:$0xff] }
   0x5   :  { %v19_v10 = vld [vmem:[%s974_s0] sm:$0xff]  ;;  %v21_v13 = vld [vmem:[%s974_s0 + $0x10] sm:$0xff]  ;;  %v131_v15 = vld [vmem:[%s975_s2 + $0x38] sm:$0xff] }
   0x6   :  { %78 = vmatpush.msra.mxu0 %v35_v2  ;;  %568 = vmatpush.msra.mxu2 %v35_v2  ;;  %v27_v14 = vld [vmem:[%s974_s0 + $0x40] sm:$0xff]  ;;  %v130_v16 = vld [vmem:[%s975_s2 + $0x30] sm:$0xff]  ;;  %v500_v17 = vld [vmem:[%s975_s2 + $0x78] sm:$0xff] }
   0x7   :  { %143 = vmatpush.msra.mxu1 %v131_v15  ;;  %v129_v18 = vld [vmem:[%s975_s2 + $0x28] sm:$0xff]  ;;  %v499_v19 = vld [vmem:[%s975_s2 + $0x70] sm:$0xff]  ;;  %v128_v21 = vld [vmem:[%s975_s2 + $0x20] sm:$0xff] }
   0x8   :  { %79 = vmatpush.msra.mxu0 %v34_v3  ;;  %569 = vmatpush.msra.mxu2 %v34_v3  ;;  %v498_v20 = vld [vmem:[%s975_s2 + $0x68] sm:$0xff]  ;;  %v22_v22 = vld [vmem:[%s974_s0 + $0x18] sm:$0xff]  ;;  %v497_v23 = vld [vmem:[%s975_s2 + $0x60] sm:$0xff] }
   0x9   :  { %144 = vmatpush.msra.mxu1 %v130_v16  ;;  %v127_v24 = vld [vmem:[%s975_s2 + $0x18] sm:$0xff]  ;;  %v126_v25 = vld [vmem:[%s975_s2 + $0x10] sm:$0xff]  ;;  %v125_v26 = vld [vmem:[%s975_s2 + $0x8] sm:$0xff] }
   0xa   :  { %80 = vmatpush.msra.mxu0 %v33_v4  ;;  %570 = vmatpush.msra.mxu2 %v33_v4  ;;  %v23_v27 = vld [vmem:[%s974_s0 + $0x20] sm:$0xff]  ;;  %v24_v28 = vld [vmem:[%s974_s0 + $0x28] sm:$0xff]  ;;  %v25_v29 = vld [vmem:[%s974_s0 + $0x30] sm:$0xff] }
   0xb   :  { %145 = vmatpush.msra.mxu1 %v129_v18  ;;  %v124_v30 = vld [vmem:[%s975_s2] sm:$0xff]  ;;  %v496_v31 = vld [vmem:[%s975_s2 + $0x58] sm:$0xff]  ;;  %v495_v32 = vld [vmem:[%s975_s2 + $0x50] sm:$0xff] }
   0xc   :  { %81 = vmatpush.msra.mxu0 %v32_v5  ;;  %571 = vmatpush.msra.mxu2 %v32_v5  ;;  %v509_v33 = vld [vmem:[%s975_s2 + $0xb8] sm:$0xff]  ;;  %v508_v34 = vld [vmem:[%s975_s2 + $0xb0] sm:$0xff]  ;;  %v494_v35 = vld [vmem:[%s975_s2 + $0x48] sm:$0xff] }
   0xd   :  { %146 = vmatpush.msra.mxu1 %v128_v21  ;;  %212 = vmatpush.msra.mxu3 %v509_v33  ;;  %v493_v36 = vld [vmem:[%s975_s2 + $0x40] sm:$0xff]  ;;  %v507_v37 = vld [vmem:[%s975_s2 + $0xa8] sm:$0xff]  ;;  %v505_v39 = vld [vmem:[%s975_s2 + $0x98] sm:$0xff] }
   0xe   :  { %82 = vmatpush.msra.mxu0 %v31_v6  ;;  %572 = vmatpush.msra.mxu2 %v31_v6  ;;  %v506_v38 = vld [vmem:[%s975_s2 + $0xa0] sm:$0xff]  ;;  %v518_v40 = vld [vmem:[%s975_s2 + $0xf8] sm:$0xff]  ;;  %v504_v41 = vld [vmem:[%s975_s2 + $0x90] sm:$0xff] }
   0xf   :  { %147 = vmatpush.msra.mxu1 %v127_v24  ;;  %213 = vmatpush.msra.mxu3 %v508_v34  ;;  %v503_v42 = vld [vmem:[%s975_s2 + $0x88] sm:$0xff]  ;;  %v502_v43 = vld [vmem:[%s975_s2 + $0x80] sm:$0xff]  ;;  %v517_v44 = vld [vmem:[%s975_s2 + $0xf0] sm:$0xff] }
  0x10   :  { %83 = vmatpush.msra.mxu0 %v30_v7  ;;  %573 = vmatpush.msra.mxu2 %v30_v7  ;;  %v516_v45 = vld [vmem:[%s975_s2 + $0xe8] sm:$0xff]  ;;  %v527_v46 = vld [vmem:[%s975_s2 + $0x138] sm:$0xff]  ;;  %v515_v47 = vld [vmem:[%s975_s2 + $0xe0] sm:$0xff] }
  0x11   :  { %148 = vmatpush.msra.mxu1 %v126_v25  ;;  %214 = vmatpush.msra.mxu3 %v507_v37  ;;  %v526_v48 = vld [vmem:[%s975_s2 + $0x130] sm:$0xff]  ;;  %v525_v49 = vld [vmem:[%s975_s2 + $0x128] sm:$0xff]  ;;  %v514_v50 = vld [vmem:[%s975_s2 + $0xd8] sm:$0xff] }
  0x12   :  { %84 = vmatpush.msra.mxu0 %v29_v8  ;;  %574 = vmatpush.msra.mxu2 %v29_v8  ;;  %v513_v51 = vld [vmem:[%s975_s2 + $0xd0] sm:$0xff]  ;;  %v512_v52 = vld [vmem:[%s975_s2 + $0xc8] sm:$0xff]  ;;  %v524_v53 = vld [vmem:[%s975_s2 + $0x120] sm:$0xff] }
  0x13   :  { %149 = vmatpush.msra.mxu1 %v125_v26  ;;  %215 = vmatpush.msra.mxu3 %v506_v38  ;;  %v523_v54 = vld [vmem:[%s975_s2 + $0x118] sm:$0xff]  ;;  %v511_v56 = vld [vmem:[%s975_s2 + $0xc0] sm:$0xff]  ;;  %v522_v57 = vld [vmem:[%s975_s2 + $0x110] sm:$0xff] }
  0x14   :  { %85 = vmatpush.msra.mxu0 %v28_v9  ;;  %575 = vmatpush.msra.mxu2 %v28_v9  ;;  %v536_v55 = vld [vmem:[%s975_s2 + $0x178] sm:$0xff]  ;;  %v535_v58 = vld [vmem:[%s975_s2 + $0x170] sm:$0xff]  ;;  %v521_v59 = vld [vmem:[%s975_s2 + $0x108] sm:$0xff] }
  0x15   :  { %483 = vmatmul.msk.f32.vlgmr.msra.gmra.mxu0 %vm38_vm1, %v19_v10  ;;  %490 = vmatmul.msk.f32.vlgmr.msra.gmra.mxu2 %vm38_vm1, %v26_v12  ;;  %v520_v61 = vld [vmem:[%s975_s2 + $0x100] sm:$0xff]  ;;  %v534_v62 = vld [vmem:[%s975_s2 + $0x168] sm:$0xff]  ;;  %v532_v0 = vld [vmem:[%s975_s2 + $0x158] sm:$0xff] }
  0x16   :  { %177 = vmatpush.msrb.mxu2 %v500_v17  ;;  %150 = vmatpush.msra.mxu1 %v124_v30  ;;  %v533_v63 = vld [vmem:[%s975_s2 + $0x160] sm:$0xff]  ;;  %v531_v1 = vld [vmem:[%s975_s2 + $0x150] sm:$0xff]  ;;  %v530_v2 = vld [vmem:[%s975_s2 + $0x148] sm:$0xff] }
  0x17   :  { %216 = vmatpush.msra.mxu3 %v505_v39  ;;  %v529_v4 = vld [vmem:[%s975_s2 + $0x140] sm:$0xff]  ;;  %v545_v5 = vld [vmem:[%s975_s2 + $0x1b8] sm:$0xff]  ;;  %v544_v6 = vld [vmem:[%s975_s2 + $0x1b0] sm:$0xff] }
  0x18   :  { %178 = vmatpush.msrb.mxu2 %v499_v19  ;;  %247 = vmatpush.msrb.mxu1 %v518_v40  ;;  %v554_v7 = vld [vmem:[%s975_s2 + $0x1f8] sm:$0xff]  ;;  %v543_v8 = vld [vmem:[%s975_s2 + $0x1a8] sm:$0xff]  ;;  %v553_v9 = vld [vmem:[%s975_s2 + $0x1f0] sm:$0xff] }
  0x19   :  { %217 = vmatpush.msra.mxu3 %v504_v41  ;;  %v552_v10 = vld [vmem:[%s975_s2 + $0x1e8] sm:$0xff]  ;;  %v551_v12 = vld [vmem:[%s975_s2 + $0x1e0] sm:$0xff]  ;;  %v550_v15 = vld [vmem:[%s975_s2 + $0x1d8] sm:$0xff] }
  0x1a   :  { %179 = vmatpush.msrb.mxu2 %v498_v20  ;;  %248 = vmatpush.msrb.mxu1 %v517_v44  ;;  %v540_v16 = vld [vmem:[%s975_s2 + $0x190] sm:$0xff]  ;;  %v563_v17 = vld [vmem:[%s975_s2 + $0x238] sm:$0xff]  ;;  %v539_v21 = vld [vmem:[%s975_s2 + $0x188] sm:$0xff] }
  0x1b   :  { %218 = vmatpush.msra.mxu3 %v503_v42  ;;  %v549_v19 = vld [vmem:[%s975_s2 + $0x1d0] sm:$0xff]  ;;  %v538_v24 = vld [vmem:[%s975_s2 + $0x180] sm:$0xff] }
  0x1c   :  { %180 = vmatpush.msrb.mxu2 %v497_v23  ;;  %249 = vmatpush.msrb.mxu1 %v516_v45  ;;  %v562_v20 = vld [vmem:[%s975_s2 + $0x230] sm:$0xff]  ;;  %v548_v23 = vld [vmem:[%s975_s2 + $0x1c8] sm:$0xff]  ;;  %v560_v25 = vld [vmem:[%s975_s2 + $0x220] sm:$0xff] }
  0x1d   :  { %484 = vmatmul.msk.f32.gmra.mxu0 %vm38_vm1, %v20_v11  ;;  %491 = vmatmul.msk.f32.gmra.mxu2 %vm38_vm1, %v27_v14  ;;  %v542_v11 = vld [vmem:[%s975_s2 + $0x1a0] sm:$0xff] }
  0x1e   :  { %181 = vmatpush.msrb.mxu2 %v496_v31  ;;  %219 = vmatpush.msra.mxu3 %v502_v43  ;;  %v547_v26 = vld [vmem:[%s975_s2 + $0x1c0] sm:$0xff]  ;;  %v557_v31 = vld [vmem:[%s975_s2 + $0x208] sm:$0xff] }
  0x1f   :  { %250 = vmatpush.msrb.mxu1 %v515_v47 }
  0x20   :  { %182 = vmatpush.msrb.mxu2 %v495_v32  ;;  %317 = vmatpush.msrb.mxu3 %v536_v55  ;;  %v556_v32 = vld [vmem:[%s975_s2 + $0x200] sm:$0xff] }
  0x21   :  { %251 = vmatpush.msrb.mxu1 %v514_v50  ;;  %v443_v50 = vld [vmem:[%s977_s3 + $0x30] sm:$0xff] }
  0x22   :  { %183 = vmatpush.msrb.mxu2 %v494_v35  ;;  %318 = vmatpush.msrb.mxu3 %v535_v58  ;;  %v438_v58 = vld [vmem:[%s977_s3 + $0x8] sm:$0xff] }
  0x23   :  { %252 = vmatpush.msrb.mxu1 %v513_v51  ;;  %v442_v51 = vld [vmem:[%s977_s3 + $0x28] sm:$0xff] }
  0x24   :  { %184 = vmatpush.msrb.mxu2 %v493_v36  ;;  %319 = vmatpush.msrb.mxu3 %v534_v62 }
  0x25   :  { %485 = vmatmul.msk.f32.gmra.mxu0 %vm38_vm1, %v21_v13  ;;  %253 = vmatpush.msrb.mxu1 %v512_v52  ;;  %v541_v13 = vld [vmem:[%s975_s2 + $0x198] sm:$0xff] }
  0x26   :  { %282 = vmatpush.msra.mxu2 %v527_v46  ;;  %320 = vmatpush.msrb.mxu3 %v533_v63 }
  0x27   :  { %254 = vmatpush.msrb.mxu1 %v511_v56  ;;  %v440_v56 = vld [vmem:[%s977_s3 + $0x18] sm:$0xff] }
  0x28   :  { %283 = vmatpush.msra.mxu2 %v526_v48  ;;  %321 = vmatpush.msrb.mxu3 %v532_v0 }
  0x2a   :  { %284 = vmatpush.msra.mxu2 %v525_v49  ;;  %322 = vmatpush.msrb.mxu3 %v531_v1  ;;  %v444_v49 = vld [vmem:[%s977_s3 + $0x38] sm:$0xff] }
  0x2c   :  { %285 = vmatpush.msra.mxu2 %v524_v53  ;;  %323 = vmatpush.msrb.mxu3 %v530_v2  ;;  %v441_v53 = vld [vmem:[%s977_s3 + $0x20] sm:$0xff] }
  0x2d   :  { %486 = vmatmul.msk.f32.gmra.mxu0 %vm38_vm1, %v22_v22  ;;  %v561_v22 = vld [vmem:[%s975_s2 + $0x228] sm:$0xff] }
  0x2e   :  { %286 = vmatpush.msra.mxu2 %v523_v54  ;;  %324 = vmatpush.msrb.mxu3 %v529_v4 }
  0x30   :  { %287 = vmatpush.msra.mxu2 %v522_v57  ;;  %v439_v57 = vld [vmem:[%s977_s3 + $0x10] sm:$0xff] }
  0x32   :  { %288 = vmatpush.msra.mxu2 %v521_v59  ;;  %v437_v59 = vld [vmem:[%s977_s3] sm:$0xff]  ;;  %s577_s3 = smov 64  }
  0x34   :  { %289 = vmatpush.msra.mxu2 %v520_v61 }
  0x35   :  { %487 = vmatmul.msk.f32.gmra.mxu0 %vm38_vm1, %v23_v27  ;;  %v559_v27 = vld [vmem:[%s975_s2 + $0x218] sm:$0xff] }
  0x3d   :  { %488 = vmatmul.msk.f32.gmra.mxu0 %vm38_vm1, %v24_v28 }
  0x45   :  { %489 = vmatmul.msk.f32.gmra.mxu0 %vm38_vm1, %v25_v29  ;;  %v558_v29 = vld [vmem:[%s975_s2 + $0x210] sm:$0xff] }
  0x92   :  { %v87_v60 = vpop.f32.mrf.mxu0 }
  0x93   :  { %115 = vst.msk [vmem:[%s976_s4] sm:$0xff] %vm114_vm2, %v87_v60  ;;  %492 = vmatmul.msk.f32.vlgmr.msra.gmra.mxu1 %vm114_vm2, %v87_v60 }
  0x94   :  { %352 = vmatpush.msra.mxu1 %v545_v5 }
  0x96   :  { %353 = vmatpush.msra.mxu1 %v544_v6 }
  0x98   :  { %354 = vmatpush.msra.mxu1 %v543_v8  ;;  %v108_v18 = vpop.f32.mrf.mxu2 }
  0x99   :  { %122 = vst.msk [vmem:[%s976_s4 + $0x38] sm:$0xff] %vm114_vm2, %v108_v18 }
  0x9a   :  { %v90_v3 = vpop.f32.mrf.mxu0  ;;  %355 = vmatpush.msra.mxu1 %v542_v11 }
  0x9b   :  { %116 = vst.msk [vmem:[%s976_s4 + $0x8] sm:$0xff] %vm114_vm2, %v90_v3  ;;  %501 = vmatmul.msk.f32.vlgmr.msrb.gmra.mxu2 %vm114_vm2, %v90_v3 }
  0x9c   :  { %387 = vmatpush.msrb.mxu2 %v554_v7  ;;  %356 = vmatpush.msra.mxu1 %v541_v13 }
  0x9e   :  { %388 = vmatpush.msrb.mxu2 %v553_v9  ;;  %357 = vmatpush.msra.mxu1 %v540_v16 }
  0xa0   :  { %389 = vmatpush.msrb.mxu2 %v552_v10  ;;  %358 = vmatpush.msra.mxu1 %v539_v21  ;;  %v111_v30 = vpop.f32.mrf.mxu2 }
  0xa1   :  { %123 = vst.msk [vmem:[%s976_s4 + $0x40] sm:$0xff] %vm114_vm2, %v111_v30 }
  0xa2   :  { %v93_v14 = vpop.f32.mrf.mxu0  ;;  %390 = vmatpush.msrb.mxu2 %v551_v12  ;;  %359 = vmatpush.msra.mxu1 %v538_v24 }
  0xa3   :  { %117 = vst.msk [vmem:[%s976_s4 + $0x10] sm:$0xff] %vm114_vm2, %v93_v14  ;;  %510 = vmatmul.msk.f32.vlgmr.msra.gmra.mxu3 %vm114_vm2, %v93_v14 }
  0xa4   :  { %422 = vmatpush.msra.mxu3 %v563_v17  ;;  %391 = vmatpush.msrb.mxu2 %v550_v15 }
  0xa6   :  { %423 = vmatpush.msra.mxu3 %v562_v20  ;;  %392 = vmatpush.msrb.mxu2 %v549_v19 }
  0xa8   :  { %424 = vmatpush.msra.mxu3 %v561_v22  ;;  %393 = vmatpush.msrb.mxu2 %v548_v23 }
  0xaa   :  { %v96_v28 = vpop.f32.mrf.mxu0  ;;  %425 = vmatpush.msra.mxu3 %v560_v25  ;;  %394 = vmatpush.msrb.mxu2 %v547_v26 }
  0xab   :  { %118 = vst.msk [vmem:[%s976_s4 + $0x18] sm:$0xff] %vm114_vm2, %v96_v28  ;;  %519 = vmatmul.msk.f32.vlgmr.msrb.gmra.mxu1 %vm114_vm2, %v96_v28 }
  0xac   :  { %426 = vmatpush.msra.mxu3 %v559_v27  ;;  %456 = vmatpush.msrb.mxu1 %v444_v49 }
  0xae   :  { %427 = vmatpush.msra.mxu3 %v558_v29  ;;  %457 = vmatpush.msrb.mxu1 %v443_v50 }
  0xb0   :  { %428 = vmatpush.msra.mxu3 %v557_v31  ;;  %458 = vmatpush.msrb.mxu1 %v442_v51 }
  0xb2   :  { %v99_v33 = vpop.f32.mrf.mxu0  ;;  %429 = vmatpush.msra.mxu3 %v556_v32  ;;  %459 = vmatpush.msrb.mxu1 %v441_v53 }
  0xb3   :  { %119 = vst.msk [vmem:[%s976_s4 + $0x20] sm:$0xff] %vm114_vm2, %v99_v33  ;;  %528 = vmatmul.msk.f32.vlgmr.msra.gmra.mxu2 %vm114_vm2, %v99_v33 }
  0xb4   :  { %460 = vmatpush.msrb.mxu1 %v440_v56 }
  0xb6   :  { %461 = vmatpush.msrb.mxu1 %v439_v57 }
  0xb8   :  { %462 = vmatpush.msrb.mxu1 %v438_v58 }
  0xba   :  { %v102_v34 = vpop.f32.mrf.mxu0  ;;  %463 = vmatpush.msrb.mxu1 %v437_v59 }
  0xbb   :  { %120 = vst.msk [vmem:[%s976_s4 + $0x28] sm:$0xff] %vm114_vm2, %v102_v34  ;;  %537 = vmatmul.msk.f32.vlgmr.msrb.gmra.mxu3 %vm114_vm2, %v102_v34  ;;  %555 = vmatmul.msk.f32.vlgmr.msrb.gmra.mxu2 %vm114_vm2, %v108_v18 }
  0xc2   :  { %v105_v35 = vpop.f32.mrf.mxu0 }
  0xc3   :  { %121 = vst.msk [vmem:[%s976_s4 + $0x30] sm:$0xff] %vm114_vm2, %v105_v35  ;;  %546 = vmatmul.msk.f32.vlgmr.msra.gmra.mxu1 %vm114_vm2, %v105_v35  ;;  %564 = vmatmul.msk.f32.vlgmr.msra.gmra.mxu3 %vm114_vm2, %v111_v30 }
 0x110   :  { %v152_v36 = vpop.f32.mrf.mxu1 }
 0x111   :  { %155 = vst.msk [vmem:[#allocation2] sm:$0xff] %vm114_vm2, %v152_v36 }
 0x118   :  { %v156_v37 = vld [vmem:[#allocation2] sm:$0xff] }
 0x11e   :  { %v186_v38 = vpop.f32.mrf.mxu2 }
 0x11f   :  { %v189_v39 = vadd.f32 %v186_v38, %v156_v37 }
 0x121   :  { %190 = vst.msk [vmem:[#allocation2] sm:$0xff] %vm114_vm2, %v189_v39 }
 0x126   :  { %v221_v40 = vpop.f32.mrf.mxu3 }
 0x128   :  { %v191_v41 = vld [vmem:[#allocation2] sm:$0xff]  ;;  %v256_v44 = vpop.f32.mrf.mxu1 }
 0x129   :  { %v224_v42 = vadd.f32 %v221_v40, %v191_v41 }
 0x12b   :  { %225 = vst.msk [vmem:[#allocation2] sm:$0xff] %vm114_vm2, %v224_v42 }
 0x132   :  { %v226_v43 = vld [vmem:[#allocation2] sm:$0xff] }
 0x133   :  { %v259_v45 = vadd.f32 %v256_v44, %v226_v43 }
 0x135   :  { %260 = vst.msk [vmem:[#allocation2] sm:$0xff] %vm114_vm2, %v259_v45 }
 0x136   :  { %v291_v46 = vpop.f32.mrf.mxu2 }
 0x13c   :  { %v261_v47 = vld [vmem:[#allocation2] sm:$0xff] }
 0x13d   :  { %v294_v48 = vadd.f32 %v291_v46, %v261_v47 }
 0x13e   :  { %v326_v52 = vpop.f32.mrf.mxu3  ;;  %v396_v63 = vpop.f32.mrf.mxu2 }
 0x13f   :  { %295 = vst.msk [vmem:[#allocation2] sm:$0xff] %vm114_vm2, %v294_v48 }
 0x140   :  { %v361_v60 = vpop.f32.mrf.mxu1 }
 0x146   :  { %v296_v54 = vld [vmem:[#allocation2] sm:$0xff]  ;;  %v431_v2 = vpop.f32.mrf.mxu3 }
 0x147   :  { %v329_v55 = vadd.f32 %v326_v52, %v296_v54 }
 0x149   :  { %330 = vst.msk [vmem:[#allocation2] sm:$0xff] %vm114_vm2, %v329_v55 }
 0x150   :  { %v331_v61 = vld [vmem:[#allocation2] sm:$0xff] }
 0x151   :  { %v364_v62 = vadd.f32 %v361_v60, %v331_v61 }
 0x153   :  { %365 = vst.msk [vmem:[#allocation2] sm:$0xff] %vm114_vm2, %v364_v62 }
 0x15a   :  { %v366_v0 = vld [vmem:[#allocation2] sm:$0xff] }
 0x15b   :  { %v399_v1 = vadd.f32 %v396_v63, %v366_v0 }
 0x15d   :  { %400 = vst.msk [vmem:[#allocation2] sm:$0xff] %vm114_vm2, %v399_v1 }
 0x164   :  { %v401_v3 = vld [vmem:[#allocation2] sm:$0xff] }
 0x165   :  { %v434_v4 = vadd.f32 %v431_v2, %v401_v3 }
 0x167   :  { %435 = vst.msk [vmem:[#allocation2] sm:$0xff] %vm114_vm2, %v434_v4 }
 0x16e   :  { %v436_v5 = vld [vmem:[#allocation2] sm:$0xff] }
 0x16f   :  { %565 = vmatmul.msk.f32.vlgmr.msrb.gmra.mxu1 %vm114_vm2, %v436_v5 }
 0x1ec   :  { %v465_v6 = vpop.f32.mrf.mxu1 }
 0x1ed   :  { %469 = vrot.lane.b32.xlu0 %v465_v6, %s577_s3 }
 0x25f   :  { %v470_v7 = vpop.permute.xlu0 %469 }
 0x260   :  { %v472_v8 = vsel %vm114_vm2, %v436_v5, %v470_v7 }
 0x261   :  { %473 = vst [vmem:[%s978_s5] sm:$0xff] %v472_v8 }

</bundles_post_ra>
